<compile_context>
chip_gen: v6e
topology: v6e:2x2x1
jax: 0.10.0
libtpu: 0.0.40
codegen_flags: <defaults>
</compile_context>

<pallas_src>
import jax
import jax.numpy as jnp
import numpy as np
from jax.experimental import pallas as pl
from jax.experimental.pallas import tpu as pltpu


def _round_up(n, m):
    return ((n + m - 1) // m) * m


def dqn_kernel(x_ref, w1_ref, b1_ref, w2_ref, b2_ref, w3_ref, b3_ref,
               wf_ref, bf_ref, out_ref):
    # layer1: Linear + ReLU   (bf16 MXU, f32 accumulate, f32 VPU epilogue)
    h = jnp.dot(x_ref[...], w1_ref[...], preferred_element_type=jnp.float32)
    h = jnp.maximum(h + b1_ref[...], 0.0).astype(jnp.bfloat16)
    # layer2: Linear + ReLU
    h = jnp.dot(h, w2_ref[...], preferred_element_type=jnp.float32)
    h = jnp.maximum(h + b2_ref[...], 0.0).astype(jnp.bfloat16)
    # layer3: Linear + ReLU
    h = jnp.dot(h, w3_ref[...], preferred_element_type=jnp.float32)
    h = jnp.maximum(h + b3_ref[...], 0.0).astype(jnp.bfloat16)
    # final: Linear (no activation), lane-dense (padded-to-128) store
    out = jnp.dot(h, wf_ref[...], preferred_element_type=jnp.float32)
    out_ref[...] = (out + bf_ref[...]).astype(out_ref.dtype)


def _pad2d(a, rows, cols):
    return jnp.pad(a, ((0, rows - a.shape[0]), (0, cols - a.shape[1])))


def dqn_forward(x, params, *, tm=256):
    """DQN MLP forward.  x: (batch, input_dim) f32.
    params: (w1, b1, w2, b2, w3, b3, wf, bf), weights (in, out), biases (1, out)."""
    w1, b1, w2, b2, w3, b3, wf, bf = params
    batch, input_dim = x.shape
    h1, h2, h3 = w1.shape[1], w2.shape[1], w3.shape[1]
    out_dim = wf.shape[1]

    # Lane-dense padding: every feature dim becomes a multiple of 128.
    d_in = _round_up(input_dim, 128)
    d_h1 = _round_up(h1, 128)
    d_h2 = _round_up(h2, 128)
    d_h3 = _round_up(h3, 128)
    d_out = _round_up(out_dim, 128)

    # Batch tile: TM rows per grid step (multiple of 8 sublanes), clamped to batch.
    tm = max(8, min(tm, _round_up(batch, 8)))
    padded_batch = _round_up(batch, tm)
    grid = (padded_batch // tm,)

    # bf16 MXU operands; biases kept f32 for the VPU epilogue.
    xp = _pad2d(x, padded_batch, d_in).astype(jnp.bfloat16)
    w1p = _pad2d(w1, d_in, d_h1).astype(jnp.bfloat16)
    w2p = _pad2d(w2, d_h1, d_h2).astype(jnp.bfloat16)
    w3p = _pad2d(w3, d_h2, d_h3).astype(jnp.bfloat16)
    wfp = _pad2d(wf, d_h3, d_out).astype(jnp.bfloat16)
    b1p = _pad2d(b1, 1, d_h1).astype(jnp.float32)
    b2p = _pad2d(b2, 1, d_h2).astype(jnp.float32)
    b3p = _pad2d(b3, 1, d_h3).astype(jnp.float32)
    bfp = _pad2d(bf, 1, d_out).astype(jnp.float32)

    def resident(shape):
        # Same block for every grid step -> stays resident in VMEM (no re-DMA).
        return pl.BlockSpec(shape, lambda i: (0, 0))

    flops = 2 * batch * (input_dim * h1 + h1 * h2 + h2 * h3 + h3 * out_dim)
    bytes_accessed = (xp.size * 2 + padded_batch * d_out * 4
                      + (w1p.size + w2p.size + w3p.size + wfp.size) * 2
                      + (b1p.size + b2p.size + b3p.size + bfp.size) * 4)

    out_padded = pl.pallas_call(
        dqn_kernel,
        out_shape=jax.ShapeDtypeStruct((padded_batch, d_out), jnp.float32),
        grid=grid,
        in_specs=[
            pl.BlockSpec((tm, d_in), lambda i: (i, 0)),      # x: tiled over batch
            resident((d_in, d_h1)), resident((1, d_h1)),     # layer1 w, b
            resident((d_h1, d_h2)), resident((1, d_h2)),     # layer2 w, b
            resident((d_h2, d_h3)), resident((1, d_h3)),     # layer3 w, b
            resident((d_h3, d_out)), resident((1, d_out)),   # final  w, b
        ],
        out_specs=pl.BlockSpec((tm, d_out), lambda i: (i, 0)),
        compiler_params=pltpu.CompilerParams(
            dimension_semantics=("parallel",),        # megacore split on v7x
            vmem_limit_bytes=32 * 1024 * 1024,        # safe on v7x's 64 MiB VMEM
        ),
        cost_estimate=pl.CostEstimate(
            flops=flops, transcendentals=0, bytes_accessed=bytes_accessed),
    )(xp, w1p, b1p, w2p, b2p, w3p, b3p, wfp, bfp)

    return out_padded[:batch, :out_dim]


def init_linear(key, in_dim, out_dim):
    # Matches PyTorch nn.Linear default init: U(-1/sqrt(fan_in), 1/sqrt(fan_in))
    kw, kb = jax.random.split(key)
    bound = 1.0 / np.sqrt(in_dim)
    w = jax.random.uniform(kw, (in_dim, out_dim), jnp.float32, -bound, bound)
    b = jax.random.uniform(kb, (1, out_dim), jnp.float32, -bound, bound)
    return w, b


if __name__ == "__main__":
    # Small shapes consistent with the module's forward.
    batch = 64
    input_dim, hidden_dim1, hidden_dim2, hidden_dim3, output_dim = 32, 64, 64, 32, 8

    key = jax.random.PRNGKey(0)
    kx, k1, k2, k3, k4 = jax.random.split(key, 5)

    x = jax.random.normal(kx, (batch, input_dim), jnp.float32)
    w1, b1 = init_linear(k1, input_dim, hidden_dim1)
    w2, b2 = init_linear(k2, hidden_dim1, hidden_dim2)
    w3, b3 = init_linear(k3, hidden_dim2, hidden_dim3)
    wf, bf = init_linear(k4, hidden_dim3, output_dim)
    params = (w1, b1, w2, b2, w3, b3, wf, bf)

    # tm=16 here so the small test exercises multiple grid steps; at real DQN
    # replay-batch sizes use the default tm=256 (or 512).
    out = dqn_forward(x, params, tm=16)
    out = jax.block_until_ready(out)
    assert out.shape == (batch, output_dim)

    # Reference in plain f32 JAX; kernel uses bf16 MXU operands -> relaxed tol.
    h = jnp.maximum(x @ w1 + b1, 0.0)
    h = jnp.maximum(h @ w2 + b2, 0.0)
    h = jnp.maximum(h @ w3 + b3, 0.0)
    ref = h @ wf + bf
    np.testing.assert_allclose(np.asarray(out), np.asarray(ref), rtol=5e-2, atol=5e-2)

    print("KERNEL_OK")
</pallas_src>

<mosaic_0001>
module attributes {stable_mosaic.version = 11 : i64} {
  func.func @dqn_kernel(%arg0: i32, %arg1: memref<16x128xbf16, #tpu.memory_space<vmem>>, %arg2: memref<128x128xbf16, #tpu.memory_space<vmem>>, %arg3: memref<1x128xf32, #tpu.memory_space<vmem>>, %arg4: memref<128x128xbf16, #tpu.memory_space<vmem>>, %arg5: memref<1x128xf32, #tpu.memory_space<vmem>>, %arg6: memref<128x128xbf16, #tpu.memory_space<vmem>>, %arg7: memref<1x128xf32, #tpu.memory_space<vmem>>, %arg8: memref<128x128xbf16, #tpu.memory_space<vmem>>, %arg9: memref<1x128xf32, #tpu.memory_space<vmem>>, %arg10: memref<16x128xf32, #tpu.memory_space<vmem>>) attributes {dimension_semantics = [#tpu.dimension_semantics<parallel>], iteration_bounds = array<i64: 4>, scalar_prefetch = 0 : i64, scratch_operands = 0 : i64, tpu.core_type = #tpu.core_type<tc>, window_params = [{transform_indices = @transform_0, window_bounds = array<i64: 16, 128>}, {pipeline_mode = #tpu.pipeline_mode<synchronous>, transform_indices = @transform_1, window_bounds = array<i64: 128, 128>}, {pipeline_mode = #tpu.pipeline_mode<synchronous>, transform_indices = @transform_2, window_bounds = array<i64: 1, 128>}, {pipeline_mode = #tpu.pipeline_mode<synchronous>, transform_indices = @transform_3, window_bounds = array<i64: 128, 128>}, {pipeline_mode = #tpu.pipeline_mode<synchronous>, transform_indices = @transform_4, window_bounds = array<i64: 1, 128>}, {pipeline_mode = #tpu.pipeline_mode<synchronous>, transform_indices = @transform_5, window_bounds = array<i64: 128, 128>}, {pipeline_mode = #tpu.pipeline_mode<synchronous>, transform_indices = @transform_6, window_bounds = array<i64: 1, 128>}, {pipeline_mode = #tpu.pipeline_mode<synchronous>, transform_indices = @transform_7, window_bounds = array<i64: 128, 128>}, {pipeline_mode = #tpu.pipeline_mode<synchronous>, transform_indices = @transform_8, window_bounds = array<i64: 1, 128>}, {transform_indices = @transform_9, window_bounds = array<i64: 16, 128>}]} {
    %c0 = arith.constant 0 : index
    %c0_0 = arith.constant 0 : index
    %0 = vector.load %arg1[%c0, %c0_0] : memref<16x128xbf16, #tpu.memory_space<vmem>>, vector<16x128xbf16>
    %c0_1 = arith.constant 0 : index
    %c0_2 = arith.constant 0 : index
    %1 = vector.load %arg2[%c0_1, %c0_2] : memref<128x128xbf16, #tpu.memory_space<vmem>>, vector<128x128xbf16>
    %cst = arith.constant dense<0.000000e+00> : vector<16x128xf32>
    %2 = tpu.matmul %0, %1, %cst {dimension_numbers = #tpu.dot_dimension_numbers<[1], [0], [0], [1], [0, 0, 1, 1], [], []>} : vector<16x128xbf16>, vector<128x128xbf16>, vector<16x128xf32> -> vector<16x128xf32>
    %c0_3 = arith.constant 0 : index
    %c0_4 = arith.constant 0 : index
    %3 = vector.load %arg3[%c0_3, %c0_4] : memref<1x128xf32, #tpu.memory_space<vmem>>, vector<1x128xf32>
    %4 = vector.broadcast %3 : vector<1x128xf32> to vector<16x128xf32>
    %5 = arith.addf %2, %4 : vector<16x128xf32>
    %cst_5 = arith.constant 0.000000e+00 : f32
    %6 = vector.broadcast %cst_5 : f32 to vector<16x128xf32>
    %7 = arith.maximumf %5, %6 : vector<16x128xf32>
    %8 = arith.truncf %7 : vector<16x128xf32> to vector<16x128xbf16>
    %c0_6 = arith.constant 0 : index
    %c0_7 = arith.constant 0 : index
    %9 = vector.load %arg4[%c0_6, %c0_7] : memref<128x128xbf16, #tpu.memory_space<vmem>>, vector<128x128xbf16>
    %cst_8 = arith.constant dense<0.000000e+00> : vector<16x128xf32>
    %10 = tpu.matmul %8, %9, %cst_8 {dimension_numbers = #tpu.dot_dimension_numbers<[1], [0], [0], [1], [0, 0, 1, 1], [], []>} : vector<16x128xbf16>, vector<128x128xbf16>, vector<16x128xf32> -> vector<16x128xf32>
    %c0_9 = arith.constant 0 : index
    %c0_10 = arith.constant 0 : index
    %11 = vector.load %arg5[%c0_9, %c0_10] : memref<1x128xf32, #tpu.memory_space<vmem>>, vector<1x128xf32>
    %12 = vector.broadcast %11 : vector<1x128xf32> to vector<16x128xf32>
    %13 = arith.addf %10, %12 : vector<16x128xf32>
    %cst_11 = arith.constant 0.000000e+00 : f32
    %14 = vector.broadcast %cst_11 : f32 to vector<16x128xf32>
    %15 = arith.maximumf %13, %14 : vector<16x128xf32>
    %16 = arith.truncf %15 : vector<16x128xf32> to vector<16x128xbf16>
    %c0_12 = arith.constant 0 : index
    %c0_13 = arith.constant 0 : index
    %17 = vector.load %arg6[%c0_12, %c0_13] : memref<128x128xbf16, #tpu.memory_space<vmem>>, vector<128x128xbf16>
    %cst_14 = arith.constant dense<0.000000e+00> : vector<16x128xf32>
    %18 = tpu.matmul %16, %17, %cst_14 {dimension_numbers = #tpu.dot_dimension_numbers<[1], [0], [0], [1], [0, 0, 1, 1], [], []>} : vector<16x128xbf16>, vector<128x128xbf16>, vector<16x128xf32> -> vector<16x128xf32>
    %c0_15 = arith.constant 0 : index
    %c0_16 = arith.constant 0 : index
    %19 = vector.load %arg7[%c0_15, %c0_16] : memref<1x128xf32, #tpu.memory_space<vmem>>, vector<1x128xf32>
    %20 = vector.broadcast %19 : vector<1x128xf32> to vector<16x128xf32>
    %21 = arith.addf %18, %20 : vector<16x128xf32>
    %cst_17 = arith.constant 0.000000e+00 : f32
    %22 = vector.broadcast %cst_17 : f32 to vector<16x128xf32>
    %23 = arith.maximumf %21, %22 : vector<16x128xf32>
    %24 = arith.truncf %23 : vector<16x128xf32> to vector<16x128xbf16>
    %c0_18 = arith.constant 0 : index
    %c0_19 = arith.constant 0 : index
    %25 = vector.load %arg8[%c0_18, %c0_19] : memref<128x128xbf16, #tpu.memory_space<vmem>>, vector<128x128xbf16>
    %cst_20 = arith.constant dense<0.000000e+00> : vector<16x128xf32>
    %26 = tpu.matmul %24, %25, %cst_20 {dimension_numbers = #tpu.dot_dimension_numbers<[1], [0], [0], [1], [0, 0, 1, 1], [], []>} : vector<16x128xbf16>, vector<128x128xbf16>, vector<16x128xf32> -> vector<16x128xf32>
    %c0_21 = arith.constant 0 : index
    %c0_22 = arith.constant 0 : index
    %27 = vector.load %arg9[%c0_21, %c0_22] : memref<1x128xf32, #tpu.memory_space<vmem>>, vector<1x128xf32>
    %28 = vector.broadcast %27 : vector<1x128xf32> to vector<16x128xf32>
    %29 = arith.addf %26, %28 : vector<16x128xf32>
    %c0_23 = arith.constant 0 : index
    %c0_24 = arith.constant 0 : index
    %30 = vector.load %arg10[%c0_23, %c0_24] : memref<16x128xf32, #tpu.memory_space<vmem>>, vector<16x128xf32>
    tpu.vector_store %arg10[%c0_23, %c0_24], %29 {strides = array<i32>} : memref<16x128xf32, #tpu.memory_space<vmem>>, vector<16x128xf32>,
    return
  }
  func.func @transform_0(%arg0: i32) -> (i32, i32) {
    %c0_i32 = arith.constant 0 : i32
    %c0_i32_0 = arith.constant 0 : i32
    return %arg0, %c0_i32 : i32, i32
  }
  func.func @transform_1(%arg0: i32) -> (i32, i32) {
    %c0_i32 = arith.constant 0 : i32
    %c0_i32_0 = arith.constant 0 : i32
    %c0_i32_1 = arith.constant 0 : i32
    return %c0_i32, %c0_i32_0 : i32, i32
  }
  func.func @transform_2(%arg0: i32) -> (i32, i32) {
    %c0_i32 = arith.constant 0 : i32
    %c0_i32_0 = arith.constant 0 : i32
    %c0_i32_1 = arith.constant 0 : i32
    return %c0_i32, %c0_i32_0 : i32, i32
  }
  func.func @transform_3(%arg0: i32) -> (i32, i32) {
    %c0_i32 = arith.constant 0 : i32
    %c0_i32_0 = arith.constant 0 : i32
    %c0_i32_1 = arith.constant 0 : i32
    return %c0_i32, %c0_i32_0 : i32, i32
  }
  func.func @transform_4(%arg0: i32) -> (i32, i32) {
    %c0_i32 = arith.constant 0 : i32
    %c0_i32_0 = arith.constant 0 : i32
    %c0_i32_1 = arith.constant 0 : i32
    return %c0_i32, %c0_i32_0 : i32, i32
  }
  func.func @transform_5(%arg0: i32) -> (i32, i32) {
    %c0_i32 = arith.constant 0 : i32
    %c0_i32_0 = arith.constant 0 : i32
    %c0_i32_1 = arith.constant 0 : i32
    return %c0_i32, %c0_i32_0 : i32, i32
  }
  func.func @transform_6(%arg0: i32) -> (i32, i32) {
    %c0_i32 = arith.constant 0 : i32
    %c0_i32_0 = arith.constant 0 : i32
    %c0_i32_1 = arith.constant 0 : i32
    return %c0_i32, %c0_i32_0 : i32, i32
  }
  func.func @transform_7(%arg0: i32) -> (i32, i32) {
    %c0_i32 = arith.constant 0 : i32
    %c0_i32_0 = arith.constant 0 : i32
    %c0_i32_1 = arith.constant 0 : i32
    return %c0_i32, %c0_i32_0 : i32, i32
  }
  func.func @transform_8(%arg0: i32) -> (i32, i32) {
    %c0_i32 = arith.constant 0 : i32
    %c0_i32_0 = arith.constant 0 : i32
    %c0_i32_1 = arith.constant 0 : i32
    return %c0_i32, %c0_i32_0 : i32, i32
  }
  func.func @transform_9(%arg0: i32) -> (i32, i32) {
    %c0_i32 = arith.constant 0 : i32
    %c0_i32_0 = arith.constant 0 : i32
    return %arg0, %c0_i32 : i32, i32
  }
}

</mosaic_0001>

<bundles_post_ra>
// kernel: tpu_custom_call.1
= control target key start
LH: loop header
LB: loop body
LE: loop exit
PB: predicated region body
PF: predicated region fallthrough
CT: control target
= control target key end

     0   :  { %s1852_s0 = inlined_call_operand.hbm [shape: bf16[64,128], index: 0, kind: input, shape index: {}]   ;;  %s1853_s1 = inlined_call_operand.hbm [shape: bf16[128,128], index: 1, kind: input, shape index: {}]   ;;  %s1854_s2 = inlined_call_operand.vmem [shape: f32[1,128], index: 2, kind: input, shape index: {}]   ;;  %s1855_s3 = inlined_call_operand.hbm [shape: bf16[128,128], index: 3, kind: input, shape index: {}]   ;;  %s1856_s4 = inlined_call_operand.vmem [shape: f32[1,128], index: 4, kind: input, shape index: {}]   ;;  %s1857_s5 = inlined_call_operand.hbm [shape: bf16[128,128], index: 5, kind: input, shape index: {}]   ;;  %s1858_s6 = inlined_call_operand.vmem [shape: f32[1,128], index: 6, kind: input, shape index: {}]   ;;  %s1859_s7 = inlined_call_operand.hbm [shape: bf16[128,128], index: 7, kind: input, shape index: {}]   ;;  %s1860_s8 = inlined_call_operand.vmem [shape: f32[1,128], index: 8, kind: input, shape index: {}]   ;;  %s1861_s9 = inlined_call_operand.hbm [shape: f32[64,128], index: 9, kind: output, shape index: {}]  }
   0x1   :  { %1868 = sst [smem:[#allocation16_spill]] %s1853_s1 }
   0x2   :  { %1869 = sst [smem:[#allocation17_spill]] %s1855_s3 }
   0x3   :  { %1870 = sst [smem:[#allocation18_spill]] %s1857_s5 }
   0x4   :  { %14 = vsyncpa [#allocation3], 0 }
   0x5   :  { %16 = vsyncpa [#allocation3 + $0x1], 0 }
   0x6   :  { %17 = vsyncpa [#allocation6], 0 }
   0x7   :  { %18 = vsyncpa [#allocation9], 0 }
   0x8   :  { %19 = vsyncpa [#allocation4], 0 }
   0x9   :  { %21 = vsyncpa [#allocation4 + $0x1], 0  ;;  %s1575_s30 = smov 0   ;;  %s1577_s10 = smov 0  }
   0xa   :  { %s1579_s11 = smov 0   ;;  %s1581_s12 = smov 0  }
   0xb LB: > { %s1596_s13 = sadd.s32 4294967295, %s1511_s12   ;;  %s1004_s14 = sadd.s32 4294967294, %s1511_s12   ;;  %s1511_s12 = sphi %s1581_s12, %s1893_s12   ;;  %s1507_s11 = sphi %s1579_s11, %s1892_s11   ;;  %s1503_s10 = sphi %s1577_s10, %s1891_s10   ;;  %s1499_s30 = sphi %s1575_s30, %s1890_s30  }
   0xc   : > { %p47_p0 = scmp.ne.s32.totalorder %s1503_s10, %s1499_s30  ;;  %p1862_p1 = scmp.eq.s32.totalorder %s1596_s13, 0 }
   0xd   : > { %p239_p2 = scmp.eq.s32.totalorder %s1596_s13, 3  ;;  %p245_p3 = scmp.eq.s32.totalorder %s1004_s14, 3 }
   0xe   : > { %p1605_p4 = por %p1862_p1, %p47_p0  ;;  %p1005_p5 = scmp.ge.s32.totalorder %s1511_s12, 1 }
   0xf   : > { %p1610_p6 = por %p245_p3, %p47_p0  ;;  %p252_p7 = scmp.lt.s32.totalorder %s1511_s12, 5 }
  0x10   : > { %s1871_s15 = scalar_select %p1605_p4, 1, 0 }
  0x11   : > { %s1872_s16 = scalar_select %p1610_p6, 1, 0 }
  0x12   : > { %p1615_p8 = pnand %p1005_p5, %p252_p7  ;;  %s1513_s18 = smov [#allocation5]  }
  0x13   : > { %s264_s19 = sshll.u32 %s1513_s18, 4  ;;  %s1514_s21 = smov [#allocation8]   ;;  %s265_s19 = int_to_ptr.vmem [resolvable:$true] %s264_s19 }
  0x14   : > { %s1873_s17 = scalar_select %p1615_p8, 1, 0 }
  0x15   : > { %p1201_p9 = pneg %p1615_p8  ;;  %s296_s22 = sshll.u32 %s1514_s21, 4  ;;  %s297_s22 = int_to_ptr.vmem [resolvable:$true] %s296_s22 }
  0x16   : > { %s1515_s23 = smov [#allocation7]   ;;  %s1318_s25 = scalar_lea.vmem %s265_s19, 1024 }
  0x17   : > { %p1623_p10 = pnand %p1201_p9, %p1862_p1  ;;  %s280_s24 = sshll.u32 %s1515_s23, 4  ;;  %s281_s24 = int_to_ptr.vmem [resolvable:$true] %s280_s24 }
  0x18   : > { %p1319_p12 = scmp.ne.s32.totalorder %s265_s19, %s1318_s25  ;;  %p1326_p3 = scmp.lt.s32.totalorder %s265_s19, %s265_s19 }
  0x19   : > { %p1309_p11 = pneg %p1623_p10  ;;  %p1327_p5 = scmp.lt.s32.totalorder %s1318_s25, %s1318_s25 }
  0x1b   : > { %p1321_p13 = pnand %p1319_p12, %p1309_p11  ;;  %p1328_p7 = por %p1327_p5, %p1326_p3 }
  0x1d   : > { %p1322_p0 = pneg %p1321_p13 }
  0x1f   : > { %p1329_p9 = pnand %p1328_p7, %p1322_p0 }
  0x21   : > { %1332 = shalt.err (!%p1329_p9)
}
  0x22   : > { %s1863_s26 = smov 64   ;;  %s1864_s27 = smov 4  }
  0x23   : > { %s1875_s1 = sld [smem:[#allocation16_spill]]  ;;  %s1344_s14 = scalar_lea.vmem %s297_s22, 1024 }
  0x24   : > { %p1345_p12 = scmp.ne.s32.totalorder %s297_s22, %s1344_s14  ;;  %p1352_p0 = scmp.lt.s32.totalorder %s297_s22, %s297_s22 }
  0x25   : > { %p1353_p5 = scmp.lt.s32.totalorder %s1344_s14, %s1344_s14 }
  0x26   : > { %p1347_p13 = pnand %p1345_p12, %p1309_p11 }
  0x27   : > { %p1354_p7 = por %p1353_p5, %p1352_p0 }
  0x28   : > { %p1348_p3 = pneg %p1347_p13 }
  0x29   : > { %1204 = dma.hbm_to_vmem [thread:$0]  (!%p1623_p10), %s1875_s1, 1024, %s265_s19, [#allocation6], %s1863_s26, %s1863_s26, %s1864_s27  }
  0x2a   : > { %p1355_p9 = pnand %p1354_p7, %p1348_p3 }
  0x2c   : > { %1358 = shalt.err (!%p1355_p9)
}
  0x2d   : > { %s1876_s5 = sld [smem:[#allocation18_spill]]  ;;  %s1370_s19 = scalar_lea.vmem %s281_s24, 1024 }
  0x2e   : > { %p1371_p1 = scmp.ne.s32.totalorder %s281_s24, %s1370_s19  ;;  %p1378_p0 = scmp.lt.s32.totalorder %s281_s24, %s281_s24 }
  0x2f   : > { %p1379_p3 = scmp.lt.s32.totalorder %s1370_s19, %s1370_s19 }
  0x30   : > { %p1373_p12 = pnand %p1371_p1, %p1309_p11 }
  0x31   : > { %p1380_p5 = por %p1379_p3, %p1378_p0 }
  0x32   : > { %p1374_p13 = pneg %p1373_p12 }
  0x33   : > { %1210 = dma.hbm_to_vmem [thread:$0]  (!%p1623_p10), %s1876_s5, 1024, %s297_s22, [#allocation9], %s1863_s26, %s1863_s26, %s1864_s27  }
  0x34   : > { %p1381_p7 = pnand %p1380_p5, %p1374_p13 }
  0x36   : > { %1384 = shalt.err (!%p1381_p7)
}
  0x37   : > { %s1877_s3 = sld [smem:[#allocation17_spill]]  ;;  %s1518_s22 = smov [#allocation10]  }
  0x38   : > { %s312_s28 = sshll.u32 %s1518_s22, 4  ;;  %s313_s28 = int_to_ptr.vmem [resolvable:$true] %s312_s28 }
  0x39   : > { %s1396_s29 = scalar_lea.vmem %s313_s28, 1024  ;;  %p1404_p13 = scmp.lt.s32.totalorder %s313_s28, %s313_s28 }
  0x3a   : > { %p1397_p1 = scmp.ne.s32.totalorder %s313_s28, %s1396_s29  ;;  %p1405_p0 = scmp.lt.s32.totalorder %s1396_s29, %s1396_s29 }
  0x3c   : > { %p1399_p9 = pnand %p1397_p1, %p1309_p11  ;;  %p1406_p3 = por %p1405_p0, %p1404_p13 }
  0x3d   : > { %1207 = dma.hbm_to_vmem [thread:$0]  (!%p1623_p10), %s1877_s3, 1024, %s281_s24, [#allocation6], %s1863_s26, %s1863_s26, %s1864_s27  }
  0x3e   : > { %p1400_p12 = pneg %p1399_p9 }
  0x40   : > { %p1407_p5 = pnand %p1406_p3, %p1400_p12 }
  0x42   : > { %1410 = shalt.err (!%p1407_p5)
}
  0x43   : > { %1213 = dma.hbm_to_vmem [thread:$0]  (!%p1623_p10), %s1859_s7, 1024, %s313_s28, [#allocation9], %s1863_s26, %s1863_s26, %s1864_s27  }
  0x44   : > { %s1674_s18 = sadd.s32 1, %s1511_s12   ;;  %s34_s20 = sadd.s32 1, %s1507_s11 }
  0x45   : > { %s31_s21 = ssub.s32 %s1511_s12, %s1674_s18  ;;  %p41_p11 = scmp.ne.s32.totalorder %s1507_s11, %s1503_s10 }
  0x46   : > { %p32_p7 = scmp.eq.s32.totalorder %s31_s21, 0  ;;  %p42_p1 = scmp.eq.s32.totalorder %s1511_s12, 0 }
  0x47   : > { %p1684_p9 = por %p239_p2, %p41_p11  ;;  %p1226_p12 = scmp.lt.s32.totalorder %s1511_s12, 4 }
  0x48   : > { %s1690_s23 = scalar_select %p32_p7, %s1507_s11, %s34_s20  }
  0x49   : > { %s1878_s19 = scalar_select %p1684_p9, 1, 0 }
  0x4a   : > { %p43_p13 = por %p42_p1, %p41_p11  ;;  %s329_s25 = sand.u32 1, %s1507_s11  }
  0x4b   : > { %s1011_s22 = sshll.u32 %s329_s25, 3  ;;  %s1063_s28 = sshll.u32 %s1511_s12, 7 }
  0x4c   : > { %s1697_s14 = scalar_lea.hbm %s1852_s0, %s1063_s28  ;;  %s333_s21 = scalar_lea.vmem [#allocation2], %s1011_s22 }
  0x4d   : > { %s340_s26 = sshll.u32 %s333_s21, 4  ;;  %p1701_p2 = pnand %p1226_p12, %p43_p13  ;;  %s1699_s26 = int_to_ptr.vmem [resolvable:$true] %s340_s26 }
  0x4e   : > { %s1705_s20 = scalar_lea.sflag [#allocation3], %s329_s25  ;;  %s1411_s1 = scalar_lea.hbm %s1697_s14, 128 }
  0x4f   : > { %p1412_p10 = scmp.ne.s32.totalorder %s1697_s14, %s1411_s1  ;;  %p1413_p0 = pneg %p1701_p2 }
  0x50   : > { %s1416_s22 = scalar_lea.hbm %s1852_s0, 512  ;;  %p1417_p11 = scmp.lt.s32.totalorder %s1697_s14, %s1852_s0 }
  0x51   : > { %p1414_p3 = pnand %p1413_p0, %p1412_p10  ;;  %p1418_p7 = scmp.lt.s32.totalorder %s1416_s22, %s1411_s1 }
  0x53   : > { %p1415_p5 = pneg %p1414_p3  ;;  %p1419_p1 = por %p1418_p7, %p1417_p11 }
  0x55   : > { %p1420_p12 = pnand %p1419_p1, %p1415_p5 }
  0x57   : > { %1423 = shalt.err (!%p1420_p12)
}
  0x58   : > { %s1424_s25 = scalar_lea.vmem %s1699_s26, 128  ;;  %s1519_s3 = smov [#allocation2]  }
  0x59   : > { %p1425_p13 = scmp.ne.s32.totalorder %s1699_s26, %s1424_s25  ;;  %s1429_s5 = sshll.u32 %s1519_s3, 4  ;;  %s1430_s5 = int_to_ptr.vmem [resolvable:$false] %s1429_s5 }
  0x5a   : > { %s1431_s28 = scalar_lea.vmem %s1430_s5, 256  ;;  %p1432_p3 = scmp.lt.s32.totalorder %s1699_s26, %s1430_s5 }
  0x5b   : > { %p1427_p6 = pnand %p1425_p13, %p1413_p0  ;;  %p1433_p9 = scmp.lt.s32.totalorder %s1431_s28, %s1424_s25 }
  0x5d   : > { %p1428_p10 = pneg %p1427_p6  ;;  %p1434_p4 = por %p1433_p9, %p1432_p3 }
  0x5f   : > { %p1435_p8 = pnand %p1434_p4, %p1428_p10 }
  0x61   : > { %1438 = shalt.err (!%p1435_p8)
}
  0x62   : > { %s1880_s1 = smov 4   ;;  %s1881_s29 = smov 64  }
  0x63   : > { %1217 = dma.hbm_to_vmem [thread:$0]  (!%p1701_p2), %s1697_s14, 128, %s1699_s26, %s1705_s20, %s1881_s29, %s1881_s29, %s1880_s1  }
  0x64   : > { %p1882_p6 = scmp.ne.s32.totalorder %s1873_s17, 0 }
  0x65   : > { %s1732_s3 = sand.u32 (!%p1882_p6), 1, %s1503_s10   ;;  %p1883_p4 = scmp.ne.s32.totalorder (!%p1882_p6), %s1871_s15, 0 }
  0x66   : > { %352 = sbr.rel (%p1882_p6) target bundleno = 970 (0x3ca), region = 56  ;;  %s1015_s5 = sshll.u32 (!%p1882_p6), %s1732_s3, 3 }
  0x67   : > { %s355_s22 = scalar_lea.sflag (!%p1882_p6), [#allocation3], %s1732_s3  ;;  %s1736_s24 = scalar_lea.vmem (!%p1882_p6), [#allocation2], %s1015_s5 }
  0x6b   : > { %1482 = dma.done.wait (%p1883_p4), %s355_s22, 128  }
  0x6c   : > { %1484 = vsyncadd (%p1883_p4), %s355_s22, 4294967168  ;;  %p1884_p8 = scmp.eq.s32.totalorder %s1596_s13, 0 }
  0x6e   : > { %1486 = dma.done.wait (%p1884_p8), [#allocation6], 2048   ;;  %p1885_p9 = pmov %p1884_p8 }
  0x6f   : > { %p1886_p2 = pmov %p1884_p8 }
  0x70   : > { %1488 = vsyncadd (%p1885_p9), [#allocation6], 4294965248 }
  0x71   : > { %1490 = dma.done.wait (%p1886_p2), [#allocation9], 2048   ;;  %p1887_p0 = pmov %p1886_p2 }
  0x72   : > { %v1520_v0 = vmov 0.0   ;;  %vm1521_vm0 = vmmov 0   ;;  %v1274_v1 = vld [vmem:[#allocation5 + $0x38] sm:$0xff]   ;;  %v1275_v2 = vld [vmem:[#allocation5 + $0x30] sm:$0xff]   ;;  %v1276_v3 = vld [vmem:[#allocation5 + $0x28] sm:$0xff]   ;;  %s1020_s21 = sshll.u32 %s1732_s3, 4 }
  0x73   : > { %1492 = vsyncadd (%p1887_p0), [#allocation9], 4294965248  ;;  %1101 = vmatprep.subr.bf16.mxu0 %v1520_v0  ;;  %1117 = vmatprep.mubr.msk.bf16.mxu0 %vm1521_vm0, %v1520_v0  ;;  %v1283_v4 = vld [vmem:[#allocation7 + $0x38] sm:$0xff]   ;;  %v1277_v5 = vld [vmem:[#allocation5 + $0x20] sm:$0xff]   ;;  %s408_s1 = scalar_lea.vmem [#allocation11], %s1020_s21  ;;  %s1064_s5 = sshll.u32 %s1596_s13, 8 }
  0x74   : > { %1121 = vmatprep.subr.bf16.mxu1 %v1520_v0  ;;  %1137 = vmatprep.mubr.msk.bf16.mxu1 %vm1521_vm0, %v1520_v0  ;;  %v1284_v6 = vld [vmem:[#allocation7 + $0x30] sm:$0xff]   ;;  %v1278_v7 = vld [vmem:[#allocation5 + $0x18] sm:$0xff]   ;;  %v1285_v8 = vld [vmem:[#allocation7 + $0x28] sm:$0xff]   ;;  %s893_s29 = sshll.u32 %s408_s1, 4  ;;  %s1810_s15 = scalar_lea.hbm %s1861_s9, %s1064_s5  ;;  %s1805_s29 = int_to_ptr.vmem [resolvable:$true] %s893_s29 }
  0x75   : > { %1102 = vmatpush3.bf16.msra.mxu0 %v1274_v1  ;;  %1122 = vmatpush3.bf16.msra.mxu1 %v1283_v4  ;;  %v1279_v9 = vld [vmem:[#allocation5 + $0x10] sm:$0xff]   ;;  %v1286_v10 = vld [vmem:[#allocation7 + $0x20] sm:$0xff]   ;;  %v1280_v11 = vld [vmem:[#allocation5 + $0x8] sm:$0xff]   ;;  %s880_s17 = scalar_lea.sflag [#allocation4], %s1732_s3  ;;  %s1439_s26 = scalar_lea.vmem %s1805_s29, 256 }
  0x76   : > { %1103 = vmatprep.subr.bf16.mxu0 %v1520_v0  ;;  %1123 = vmatprep.subr.bf16.mxu1 %v1520_v0  ;;  %v1287_v12 = vld [vmem:[#allocation7 + $0x18] sm:$0xff]   ;;  %v1281_v13 = vld [vmem:[#allocation5] sm:$0xff]   ;;  %v1288_v15 = vld [vmem:[#allocation7 + $0x10] sm:$0xff]   ;;  %p1440_p5 = scmp.ne.s32.totalorder %s1805_s29, %s1439_s26  ;;  %p1888_p11 = scmp.ne.s32.totalorder %s1878_s19, 0 }
  0x77   : > { %v1282_v14 = vld [vmem:[%s1736_s24] sm:$0xff]   ;;  %v1289_v16 = vld [vmem:[#allocation7 + $0x8] sm:$0xff]   ;;  %v1290_v17 = vld [vmem:[#allocation7] sm:$0xff]   ;;  %s1522_s13 = smov [#allocation11]  }
  0x78   : > { %v1291_v18 = vld [vmem:[#allocation8 + $0x38] sm:$0xff]   ;;  %v1292_v19 = vld [vmem:[#allocation8 + $0x30] sm:$0xff]   ;;  %v1293_v20 = vld [vmem:[#allocation8 + $0x28] sm:$0xff]   ;;  %p1441_p7 = pnand %p1440_p5, %p1888_p11  ;;  %s1443_s27 = sshll.u32 %s1522_s13, 4  ;;  %s1444_s27 = int_to_ptr.vmem [resolvable:$false] %s1443_s27 }
  0x79   : > { %1104 = vmatpush3.bf16.msra.mxu0 %v1275_v2  ;;  %1124 = vmatpush3.bf16.msra.mxu1 %v1284_v6  ;;  %v1294_v21 = vld [vmem:[#allocation8 + $0x20] sm:$0xff]   ;;  %v1295_v22 = vld [vmem:[#allocation8 + $0x18] sm:$0xff]   ;;  %v1021_v23 = vld [vmem:[%s1854_s2] ss:$0 sm:$0xff]  ;;  %s1445_s14 = scalar_lea.vmem %s1444_s27, 512  ;;  %p1446_p12 = scmp.lt.s32.totalorder %s1805_s29, %s1444_s27 }
  0x7a   : > { %1105 = vmatprep.subr.bf16.mxu0 %v1520_v0  ;;  %1125 = vmatprep.subr.bf16.mxu1 %v1520_v0  ;;  %v1296_v33 = vld [vmem:[#allocation8 + $0x10] sm:$0xff]   ;;  %v1297_v34 = vld [vmem:[#allocation8 + $0x8] sm:$0xff]   ;;  %v1298_v35 = vld [vmem:[#allocation8] sm:$0xff]   ;;  %p1442_p1 = pneg %p1441_p7  ;;  %p1447_p13 = scmp.lt.s32.totalorder %s1445_s14, %s1439_s26 }
  0x7b   : > { %v1299_v36 = vld [vmem:[#allocation10 + $0x38] sm:$0xff]   ;;  %v1300_v37 = vld [vmem:[#allocation10 + $0x30] sm:$0xff]   ;;  %v1301_v38 = vld [vmem:[#allocation10 + $0x28] sm:$0xff]  }
  0x7c   : > { %v1302_v39 = vld [vmem:[#allocation10 + $0x20] sm:$0xff]   ;;  %v1303_v40 = vld [vmem:[#allocation10 + $0x18] sm:$0xff]   ;;  %v1031_v41 = vld [vmem:[%s1856_s4] ss:$0 sm:$0xff]  ;;  %p1448_p10 = por %p1447_p13, %p1446_p12 }
  0x7d   : > { %1106 = vmatpush3.bf16.msra.mxu0 %v1276_v3  ;;  %1126 = vmatpush3.bf16.msra.mxu1 %v1285_v8  ;;  %v1304_v51 = vld [vmem:[#allocation10 + $0x10] sm:$0xff]   ;;  %v1305_v52 = vld [vmem:[#allocation10 + $0x8] sm:$0xff]   ;;  %v1306_v53 = vld [vmem:[#allocation10] sm:$0xff]  }
  0x7e   : > { %1107 = vmatprep.subr.bf16.mxu0 %v1520_v0  ;;  %1127 = vmatprep.subr.bf16.mxu1 %v1520_v0  ;;  %v1040_v54 = vld [vmem:[%s1858_s6] ss:$0 sm:$0xff]  ;;  %p1449_p3 = pnand %p1448_p10, %p1442_p1 }
  0x81   : > { %1108 = vmatpush3.bf16.msra.mxu0 %v1277_v5  ;;  %1128 = vmatpush3.bf16.msra.mxu1 %v1286_v10 }
  0x82   : > { %1109 = vmatprep.subr.bf16.mxu0 %v1520_v0  ;;  %1129 = vmatprep.subr.bf16.mxu1 %v1520_v0 }
  0x85   : > { %1110 = vmatpush3.bf16.msra.mxu0 %v1278_v7  ;;  %1130 = vmatpush3.bf16.msra.mxu1 %v1287_v12 }
  0x86   : > { %1111 = vmatprep.subr.bf16.mxu0 %v1520_v0  ;;  %1131 = vmatprep.subr.bf16.mxu1 %v1520_v0 }
  0x89   : > { %1112 = vmatpush3.bf16.msra.mxu0 %v1279_v9  ;;  %1132 = vmatpush3.bf16.msra.mxu1 %v1288_v15 }
  0x8a   : > { %1113 = vmatprep.subr.bf16.mxu0 %v1520_v0  ;;  %1133 = vmatprep.subr.bf16.mxu1 %v1520_v0 }
  0x8d   : > { %1114 = vmatpush3.bf16.msra.mxu0 %v1280_v11  ;;  %1134 = vmatpush3.bf16.msra.mxu1 %v1289_v16 }
  0x8e   : > { %1115 = vmatprep.subr.bf16.mxu0 %v1520_v0  ;;  %1135 = vmatprep.subr.bf16.mxu1 %v1520_v0 }
  0x91   : > { %1116 = vmatpush3.bf16.msra.mxu0 %v1281_v13  ;;  %1136 = vmatpush3.bf16.msra.mxu1 %v1290_v17 }
  0x92   : > { %1141 = vmatprep.subr.bf16.mxu0 %v1520_v0  ;;  %1161 = vmatprep.subr.bf16.mxu1 %v1520_v0 }
  0x94   : > { %1118 = vmatmul.mubr.bf16.vlgmr.msra.gmra.mxu0 %v1282_v14 }
  0x95   : > { %1157 = vmatprep.mubr.msk.bf16.mxu0 %vm1521_vm0, %v1520_v0  ;;  %1142 = vmatpush3.bf16.msra.mxu0 %v1291_v18 }
  0x96   : > { %1143 = vmatprep.subr.bf16.mxu0 %v1520_v0 }
  0x99   : > { %1144 = vmatpush3.bf16.msra.mxu0 %v1292_v19 }
  0x9a   : > { %1145 = vmatprep.subr.bf16.mxu0 %v1520_v0 }
  0x9d   : > { %1146 = vmatpush3.bf16.msra.mxu0 %v1293_v20 }
  0x9e   : > { %1147 = vmatprep.subr.bf16.mxu0 %v1520_v0 }
  0xa1   : > { %1148 = vmatpush3.bf16.msra.mxu0 %v1294_v21 }
  0xa2   : > { %1149 = vmatprep.subr.bf16.mxu0 %v1520_v0 }
  0xa5   : > { %1150 = vmatpush3.bf16.msra.mxu0 %v1295_v22 }
  0xa6   : > { %1151 = vmatprep.subr.bf16.mxu0 %v1520_v0 }
  0xa9   : > { %1152 = vmatpush3.bf16.msra.mxu0 %v1296_v33 }
  0xaa   : > { %1153 = vmatprep.subr.bf16.mxu0 %v1520_v0 }
  0xad   : > { %1154 = vmatpush3.bf16.msra.mxu0 %v1297_v34 }
  0xae   : > { %1155 = vmatprep.subr.bf16.mxu0 %v1520_v0 }
  0xb1   : > { %1156 = vmatpush3.bf16.msra.mxu0 %v1298_v35 }
 0x154   : > { %v525_v24 = vpop.f32.mrf.mxu0 }
 0x155   : > { %v526_v26 = vadd.f32 %v1021_v23, %v525_v24 }
 0x156   : > { %v1119_v25 = vpop.f32.mrf.mxu0 }
 0x157   : > { %v532_v30 = vmax.f32 %v526_v26, 0.0 }
 0x158   : > { %v528_v27 = vpop.f32.mrf.mxu0 }
 0x159   : > { %v529_v28 = vadd.f32 %v1021_v23, %v528_v27 }
 0x15a   : > { %v1120_v29 = vpop.f32.mrf.mxu0 }
 0x15b   : > { %v533_v31 = vmax.f32 %v529_v28, 0.0 }
 0x15d   : > { %v534_v32 = vpack.c.bf16 %v533_v31, %v532_v30 }
 0x15f   : > { %1138 = vmatmul.mubr.bf16.vlgmr.msra.gmra.mxu1 %v534_v32 }
 0x160   : > { %1177 = vmatprep.mubr.msk.bf16.mxu1 %vm1521_vm0, %v1520_v0  ;;  %1162 = vmatpush3.bf16.msra.mxu1 %v1299_v36 }
 0x161   : > { %1163 = vmatprep.subr.bf16.mxu1 %v1520_v0 }
 0x164   : > { %1164 = vmatpush3.bf16.msra.mxu1 %v1300_v37 }
 0x165   : > { %1165 = vmatprep.subr.bf16.mxu1 %v1520_v0 }
 0x168   : > { %1166 = vmatpush3.bf16.msra.mxu1 %v1301_v38 }
 0x169   : > { %1167 = vmatprep.subr.bf16.mxu1 %v1520_v0 }
 0x16c   : > { %1168 = vmatpush3.bf16.msra.mxu1 %v1302_v39 }
 0x16d   : > { %1169 = vmatprep.subr.bf16.mxu1 %v1520_v0 }
 0x170   : > { %1170 = vmatpush3.bf16.msra.mxu1 %v1303_v40 }
 0x171   : > { %1171 = vmatprep.subr.bf16.mxu1 %v1520_v0 }
 0x174   : > { %1172 = vmatpush3.bf16.msra.mxu1 %v1304_v51 }
 0x175   : > { %1173 = vmatprep.subr.bf16.mxu1 %v1520_v0 }
 0x178   : > { %1174 = vmatpush3.bf16.msra.mxu1 %v1305_v52 }
 0x179   : > { %1175 = vmatprep.subr.bf16.mxu1 %v1520_v0  ;;  %v1049_v0 = vld [vmem:[%s1860_s8] ss:$0 sm:$0xff] }
 0x17c   : > { %1176 = vmatpush3.bf16.msra.mxu1 %v1306_v53 }
 0x21f   : > { %v640_v42 = vpop.f32.mrf.mxu1 }
 0x220   : > { %v641_v44 = vadd.f32 %v1031_v41, %v640_v42 }
 0x221   : > { %v1139_v43 = vpop.f32.mrf.mxu1 }
 0x222   : > { %v647_v48 = vmax.f32 %v641_v44, 0.0 }
 0x223   : > { %v643_v45 = vpop.f32.mrf.mxu1 }
 0x224   : > { %v644_v46 = vadd.f32 %v1031_v41, %v643_v45 }
 0x225   : > { %v1140_v47 = vpop.f32.mrf.mxu1 }
 0x226   : > { %v648_v49 = vmax.f32 %v644_v46, 0.0 }
 0x228   : > { %v649_v50 = vpack.c.bf16 %v648_v49, %v647_v48 }
 0x22a   : > { %1158 = vmatmul.mubr.bf16.vlgmr.msra.gmra.mxu0 %v649_v50 }
 0x2ea   : > { %v755_v55 = vpop.f32.mrf.mxu0 }
 0x2eb   : > { %v756_v57 = vadd.f32 %v1040_v54, %v755_v55 }
 0x2ec   : > { %v1159_v56 = vpop.f32.mrf.mxu0 }
 0x2ed   : > { %v762_v61 = vmax.f32 %v756_v57, 0.0 }
 0x2ee   : > { %v758_v58 = vpop.f32.mrf.mxu0 }
 0x2ef   : > { %v759_v59 = vadd.f32 %v1040_v54, %v758_v58 }
 0x2f0   : > { %v1160_v60 = vpop.f32.mrf.mxu0 }
 0x2f1   : > { %v763_v62 = vmax.f32 %v759_v59, 0.0 }
 0x2f3   : > { %v764_v63 = vpack.c.bf16 %v763_v62, %v762_v61 }
 0x2f5   : > { %1178 = vmatmul.mubr.bf16.vlgmr.msra.gmra.mxu1 %v764_v63 }
 0x3b5   : > { %v870_v1 = vpop.f32.mrf.mxu1 }
 0x3b6   : > { %v871_v2 = vadd.f32 %v1049_v0, %v870_v1 }
 0x3b7   : > { %v1179_v3 = vpop.f32.mrf.mxu1 }
 0x3b8   : > { %877 = vst [vmem:[%s408_s1] sm:$0xff] %v871_v2 }
 0x3b9   : > { %v873_v4 = vpop.f32.mrf.mxu1 }
 0x3ba   : > { %v874_v5 = vadd.f32 %v1049_v0, %v873_v4 }
 0x3bb   : > { %v1180_v6 = vpop.f32.mrf.mxu1 }
 0x3bc   : > { %878 = vst [vmem:[%s408_s1 + $0x8] sm:$0xff] %v874_v5 }
 0x3bd   : > { %1452 = shalt.err (!%p1449_p3)
}
 0x3be   : > { %s1453_s20 = scalar_lea.hbm %s1810_s15, 256  ;;  %s1457_s28 = scalar_lea.hbm %s1861_s9, 1024 }
 0x3bf   : > { %p1454_p6 = scmp.ne.s32.totalorder %s1810_s15, %s1453_s20  ;;  %p1458_p9 = scmp.lt.s32.totalorder %s1810_s15, %s1861_s9 }
 0x3c0   : > { %p1459_p2 = scmp.lt.s32.totalorder %s1457_s28, %s1453_s20 }
 0x3c1   : > { %p1455_p4 = pnand %p1454_p6, %p1888_p11 }
 0x3c2   : > { %p1460_p0 = por %p1459_p2, %p1458_p9 }
 0x3c3   : > { %p1456_p8 = pneg %p1455_p4 }
 0x3c5   : > { %p1461_p5 = pnand %p1460_p0, %p1456_p8 }
 0x3c7   : > { %1464 = shalt.err (!%p1461_p5)
}
 0x3c8   : > { %s1523_s22 = smov 128   ;;  %s1524_s24 = smov 8  }
 0x3c9   : > { %1199 = dma.vmem_to_hbm [thread:$0]  (%p1888_p11), %s1805_s29, 256, %s1810_s15, %s880_s17, %s1523_s22, %s1523_s22, %s1524_s24  }
 0x3ca PF: > { %p1231_p7 = scmp.ge.s32.totalorder %s1511_s12, 2  ;;  %s908_s26 = sand.u32 1, %s1499_s30  }
 0x3cb   : > { %p1889_p1 = scmp.ne.s32.totalorder %s1872_s16, 0  ;;  %s909_s13 = scalar_lea.sflag [#allocation4], %s908_s26 }
 0x3cd   : > { %p1219_p12 = pnand %p1231_p7, %p1889_p1 }
 0x3cf   : > { %p1220_p13 = pneg %p1219_p12 }
 0x3d1   : > { %1494 = dma.done.wait (%p1220_p13), %s909_s13, 256  }
 0x3d2   : > { %1496 = vsyncadd (%p1220_p13), %s909_s13, 4294967040  ;;  %p24_p10 = scmp.ge.s32.totalorder %s1674_s18, 6   ;;  %s1890_s30 = smov %s1503_s10 }
 0x3d3   : > { %s1891_s10 = smov %s1507_s11  ;;  %s1892_s11 = smov %s1690_s23 }
 0x3d4   : > { %s1893_s12 = smov %s1674_s18  ;;  %26 = sbr.rel (!%p24_p10) target bundleno = 11 (0xb), region = 117 }
 0x3d9   :  { %914 = vsyncpa [#allocation3], 1 }
 0x3da   :  { %916 = vsyncpa [#allocation3 + $0x1], 1 }
 0x3db   :  { %917 = vsyncpa [#allocation6], 1 }
 0x3dc   :  { %918 = vsyncpa [#allocation9], 1 }
 0x3dd   :  { %919 = vsyncpa [#allocation4], 1 }
 0x3de   :  { %921 = vsyncpa [#allocation4 + $0x1], 1 }

</bundles_post_ra>
